<compile_context>
chip_gen: v5e
topology: v5e:2x2
jax: 0.10.0
libtpu: 0.0.40
codegen_flags: <defaults>
</compile_context>

<pallas_src>
import functools

import jax
import jax.numpy as jnp
from jax import lax
from jax.experimental import pallas as pl
from jax.experimental.pallas import tpu as pltpu


def _ema_kernel(T_total, tT, needs_time_mask, a_ref, c_ref, x_ref, o_ref, acc_ref):
    # a_ref  : (tT, tT)   chunk transition matrix, A[k, t] = w*(1-w)^(t-k), k<=t
    # c_ref  : (1,  tT)   carry decay, c[t] = (1-w)^(t+1)                 (f32)
    # x_ref  : (tBC, tT)  input tile   (channels x time-chunk)       (in dtype)
    # o_ref  : (tBC, tT)  output tile                                (in dtype)
    # acc_ref: (tBC, 1)   VMEM scratch — EMA state carried across time chunks
    t_idx = pl.program_id(1)

    @pl.when(t_idx == 0)
    def _():
        # Initial EMA state is x[:, :, 0] (first time column, always in-bounds).
        acc_ref[...] = x_ref[:, 0:1].astype(jnp.float32)

    x = x_ref[...]
    if needs_time_mask:
        # Zero the out-of-bounds lanes of the (single) partial time chunk so
        # uninitialized VMEM (possibly NaN/Inf) cannot poison the contraction.
        rem = T_total - t_idx * tT
        lane = lax.broadcasted_iota(jnp.int32, (1, tT), 1)
        x = jnp.where(lane < rem, x, jnp.zeros((), x.dtype))

    # out[:, t] = sum_{k<=t} w*(1-w)^(t-k) * x[:, k] + (1-w)^(t+1) * acc_in
    out = (
        jnp.dot(x, a_ref[...], preferred_element_type=jnp.float32)
        + acc_ref[...] * c_ref[...]
    )
    o_ref[...] = out.astype(o_ref.dtype)
    # Carry the state after the last timestep of this chunk into the next one.
    acc_ref[...] = out[:, -1:]


@functools.partial(jax.jit, static_argnames=("block_bc", "block_t"))
def exponential_moving_average(x, weights, *, block_bc=4096, block_t=128):
    """x: (batch, channels, time); weights: (1,) (per_channel=False)."""
    if weights.shape != (1,):
        # TODO(synk): per_channel=True (weights of shape (channels,)) needs a
        # per-channel transition matrix; not implemented in this kernel.
        raise NotImplementedError("per_channel=True is not supported")

    B, C, T = x.shape
    in_dtype = x.dtype
    w = jnp.clip(weights.astype(jnp.float32), 0.0, 1.0)[0]

    BC = B * C
    x2 = x.reshape(BC, T)  # free view: no transpose, no pad, no dtype cast

    # Time tiling: 128-wide (lane / MXU aligned) chunks; short sequences run as
    # a single full-extent chunk (legal because it equals the array dim).
    tT = T if T < block_t else block_t
    needs_time_mask = (T % tT) != 0

    # Channel tiling: sublane-aligned (16 works for both f32 and bf16 packing);
    # keep >= 2 blocks on the "parallel" BC axis when possible so both v7x
    # TensorCores get work (harmless on single-TC v5e/v6e).
    SUBLANE = 16
    if BC < 2 * SUBLANE:
        tBC = BC  # single full-extent block (always legal)
    else:
        half = ((-(-BC // 2)) + SUBLANE - 1) // SUBLANE * SUBLANE
        tBC = min(block_bc, half)

    # Chunk transition operator, built once (traced through the learnable
    # clamped coefficient). Diagonal is set explicitly so (1-w)**0 is never
    # evaluated (safe at w == 1.0).
    idx = jnp.arange(tT, dtype=jnp.int32)
    diff = idx[None, :] - idx[:, None]  # [k, t] -> t - k
    base = 1.0 - w
    decay = jnp.where(diff > 0, base ** jnp.maximum(diff, 1).astype(jnp.float32), 1.0)
    a_mat = jnp.where(diff >= 0, w * decay, 0.0).astype(in_dtype)  # (tT, tT)
    # NOTE: on v5e, casting a_mat (and x) to bf16 for f32 inputs restores full
    # MXU rate at ~1e-3 relative error; kept in in_dtype here for accuracy.
    c_row = (base ** (idx.astype(jnp.float32) + 1.0))[None, :]     # (1, tT) f32

    grid = (pl.cdiv(BC, tBC), pl.cdiv(T, tT))  # (channels: parallel, time: carried)

    kernel = functools.partial(_ema_kernel, T, tT, needs_time_mask)

    out = pl.pallas_call(
        kernel,
        out_shape=jax.ShapeDtypeStruct((BC, T), in_dtype),
        grid_spec=pltpu.PrefetchScalarGridSpec(
            num_scalar_prefetch=0,
            grid=grid,
            in_specs=[
                pl.BlockSpec((tT, tT), lambda j, t: (0, 0)),   # A (VMEM-resident)
                pl.BlockSpec((1, tT), lambda j, t: (0, 0)),    # c (VMEM-resident)
                pl.BlockSpec((tBC, tT), lambda j, t: (j, t)),  # x tile
            ],
            out_specs=pl.BlockSpec((tBC, tT), lambda j, t: (j, t)),
            scratch_shapes=[pltpu.VMEM((tBC, 1), jnp.float32)],
        ),
        compiler_params=pltpu.CompilerParams(
            dimension_semantics=("parallel", "arbitrary"),
            vmem_limit_bytes=32 * 1024 * 1024,
        ),
    )(a_mat, c_row, x2)

    return out.reshape(B, C, T)


def _reference(x, weights):
    w = jnp.clip(weights.astype(jnp.float32), 0.0, 1.0)[0]

    def step(acc, xt):
        acc = w * xt + (1.0 - w) * acc
        return acc, acc

    _, ref_t = lax.scan(step, x[:, :, 0], jnp.transpose(x, (2, 0, 1)))
    return jnp.transpose(ref_t, (1, 2, 0))


if __name__ == "__main__":
    key = jax.random.PRNGKey(0)

    # Deterministic parameter init, matching nn.Parameter(torch.ones(1) * coeff_init)
    coeff_init = 0.04
    weights = jnp.ones((1,), dtype=jnp.float32) * coeff_init  # per_channel=False

    # 1) Small shape matching the module's (batch, channels, time) forward.
    B, C, T = 2, 4, 16
    x = jax.random.uniform(key, (B, C, T), dtype=jnp.float32)
    out = jax.block_until_ready(exponential_moving_average(x, weights))
    ref = _reference(x, weights)
    assert out.shape == (B, C, T)
    assert jnp.allclose(out, ref, atol=1e-5, rtol=1e-5), "mismatch (single-chunk path)"

    # 2) Multi-chunk carried state + partial edge blocks on both axes
    #    (BC=40 -> 2 channel blocks of 32; T=300 -> 3 time chunks, last masked).
    B2, C2, T2 = 4, 10, 300
    x2 = jax.random.uniform(jax.random.PRNGKey(1), (B2, C2, T2), dtype=jnp.float32)
    out2 = jax.block_until_ready(exponential_moving_average(x2, weights))
    ref2 = _reference(x2, weights)
    assert out2.shape == (B2, C2, T2)
    assert jnp.allclose(out2, ref2, atol=1e-5, rtol=1e-5), "mismatch (chunked path)"

    # 3) bf16 I/O path (no wrapper upcast; bf16 operands into the MXU, f32 acc).
    B3, C3, T3 = 4, 16, 300
    x3 = jax.random.uniform(jax.random.PRNGKey(2), (B3, C3, T3), dtype=jnp.float32)
    xb = x3.astype(jnp.bfloat16)
    outb = jax.block_until_ready(exponential_moving_average(xb, weights))
    refb = _reference(xb.astype(jnp.float32), weights)
    assert outb.dtype == jnp.bfloat16
    assert jnp.allclose(outb.astype(jnp.float32), refb, atol=3e-2, rtol=3e-2), \
        "mismatch (bf16 path)"

    # 4) Clamp edge case: weights > 1 clamps to exactly 1.0 -> output == input.
    out_c = jax.block_until_ready(
        exponential_moving_average(x, jnp.asarray([2.5], dtype=jnp.float32)))
    assert jnp.allclose(out_c, x, atol=1e-5, rtol=1e-5), "mismatch (w==1 clamp)"

    print("KERNEL_OK")
</pallas_src>

<mosaic_0001>
module attributes {stable_mosaic.version = 11 : i64} {
  func.func @_ema_kernel(%arg0: i32, %arg1: i32, %arg2: memref<16x16xf32, #tpu.memory_space<vmem>>, %arg3: memref<1x16xf32, #tpu.memory_space<vmem>>, %arg4: memref<8x16xf32, #tpu.memory_space<vmem>>, %arg5: memref<8x16xf32, #tpu.memory_space<vmem>>, %arg6: memref<8x1xf32, #tpu.memory_space<vmem>>) attributes {dimension_semantics = [#tpu.dimension_semantics<parallel>, #tpu.dimension_semantics<arbitrary>], iteration_bounds = array<i64: 1, 1>, scalar_prefetch = 0 : i64, scratch_operands = 1 : i64, tpu.core_type = #tpu.core_type<tc>, window_params = [{pipeline_mode = #tpu.pipeline_mode<synchronous>, transform_indices = @transform_0, window_bounds = array<i64: 16, 16>}, {pipeline_mode = #tpu.pipeline_mode<synchronous>, transform_indices = @transform_1, window_bounds = array<i64: 1, 16>}, {transform_indices = @transform_2, window_bounds = array<i64: 8, 16>}, {transform_indices = @transform_3, window_bounds = array<i64: 8, 16>}]} {
    %c0_i32 = arith.constant 0 : i32
    %0 = arith.cmpi eq, %arg1, %c0_i32 : i32
    %1 = arith.extui %0 : i1 to i32
    %c0_i32_0 = arith.constant 0 : i32
    %2 = arith.cmpi ne, %1, %c0_i32_0 : i32
    scf.if %2 {
      %c0_12 = arith.constant 0 : index
      %c0_13 = arith.constant 0 : index
      %15 = vector.load %arg4[%c0_12, %c0_13] : memref<8x16xf32, #tpu.memory_space<vmem>>, vector<8x1xf32>
      %c0_14 = arith.constant 0 : index
      %c0_15 = arith.constant 0 : index
      %16 = vector.load %arg6[%c0_14, %c0_15] : memref<8x1xf32, #tpu.memory_space<vmem>>, vector<8x1xf32>
      tpu.vector_store %arg6[%c0_14, %c0_15], %15 {strides = array<i32>} : memref<8x1xf32, #tpu.memory_space<vmem>>, vector<8x1xf32>,
    } else {
    }
    %c0 = arith.constant 0 : index
    %c0_1 = arith.constant 0 : index
    %3 = vector.load %arg4[%c0, %c0_1] : memref<8x16xf32, #tpu.memory_space<vmem>>, vector<8x16xf32>
    %c0_2 = arith.constant 0 : index
    %c0_3 = arith.constant 0 : index
    %4 = vector.load %arg2[%c0_2, %c0_3] : memref<16x16xf32, #tpu.memory_space<vmem>>, vector<16x16xf32>
    %cst = arith.constant dense<0.000000e+00> : vector<8x16xf32>
    %5 = tpu.matmul %3, %4, %cst {dimension_numbers = #tpu.dot_dimension_numbers<[1], [0], [0], [1], [0, 0, 1, 1], [], []>} : vector<8x16xf32>, vector<16x16xf32>, vector<8x16xf32> -> vector<8x16xf32>
    %c0_4 = arith.constant 0 : index
    %c0_5 = arith.constant 0 : index
    %6 = vector.load %arg6[%c0_4, %c0_5] : memref<8x1xf32, #tpu.memory_space<vmem>>, vector<8x1xf32>
    %c0_6 = arith.constant 0 : index
    %c0_7 = arith.constant 0 : index
    %7 = vector.load %arg3[%c0_6, %c0_7] : memref<1x16xf32, #tpu.memory_space<vmem>>, vector<1x16xf32>
    %8 = vector.broadcast %6 : vector<8x1xf32> to vector<8x16xf32>
    %9 = vector.broadcast %7 : vector<1x16xf32> to vector<8x16xf32>
    %10 = arith.mulf %8, %9 : vector<8x16xf32>
    %11 = arith.addf %5, %10 : vector<8x16xf32>
    %c0_8 = arith.constant 0 : index
    %c0_9 = arith.constant 0 : index
    %12 = vector.load %arg5[%c0_8, %c0_9] : memref<8x16xf32, #tpu.memory_space<vmem>>, vector<8x16xf32>
    tpu.vector_store %arg5[%c0_8, %c0_9], %11 {strides = array<i32>} : memref<8x16xf32, #tpu.memory_space<vmem>>, vector<8x16xf32>,
    %13 = vector.extract_strided_slice %11 {offsets = [0, 15], sizes = [8, 1], strides = [1, 1]} : vector<8x16xf32> to vector<8x1xf32>
    %c0_10 = arith.constant 0 : index
    %c0_11 = arith.constant 0 : index
    %14 = vector.load %arg6[%c0_10, %c0_11] : memref<8x1xf32, #tpu.memory_space<vmem>>, vector<8x1xf32>
    tpu.vector_store %arg6[%c0_10, %c0_11], %13 {strides = array<i32>} : memref<8x1xf32, #tpu.memory_space<vmem>>, vector<8x1xf32>,
    return
  }
  func.func @transform_0(%arg0: i32, %arg1: i32) -> (i32, i32) {
    %c0_i32 = arith.constant 0 : i32
    %c0_i32_0 = arith.constant 0 : i32
    %c0_i32_1 = arith.constant 0 : i32
    return %c0_i32, %c0_i32_0 : i32, i32
  }
  func.func @transform_1(%arg0: i32, %arg1: i32) -> (i32, i32) {
    %c0_i32 = arith.constant 0 : i32
    %c0_i32_0 = arith.constant 0 : i32
    %c0_i32_1 = arith.constant 0 : i32
    return %c0_i32, %c0_i32_0 : i32, i32
  }
  func.func @transform_2(%arg0: i32, %arg1: i32) -> (i32, i32) {
    %c0_i32 = arith.constant 0 : i32
    return %arg0, %arg1 : i32, i32
  }
  func.func @transform_3(%arg0: i32, %arg1: i32) -> (i32, i32) {
    %c0_i32 = arith.constant 0 : i32
    return %arg0, %arg1 : i32, i32
  }
}

</mosaic_0001>

<bundles_post_ra>
// kernel: exponential_moving_average.1
= control target key start
LH: loop header
LB: loop body
LE: loop exit
PB: predicated region body
PF: predicated region fallthrough
CT: control target
= control target key end

     0   :  { %vm20_vm0 = vcmask 7168   ;;  %vm36_vm1 = vcmask 130048   ;;  %v115_v3 = vmov 0   ;;  %s157_s0 = inlined_call_operand.vmem [shape: f32[16,16], index: 0, kind: input, shape index: {}]   ;;  %s158_s1 = inlined_call_operand.vmem [shape: f32[1,16], index: 1, kind: input, shape index: {}]   ;;  %s159_s2 = inlined_call_operand.vmem [shape: f32[8,16], index: 2, kind: input, shape index: {}]   ;;  %s160_s3 = inlined_call_operand.hbm [shape: f32[8,16], index: 3, kind: output, shape index: {}]  }
   0x1   :  { %v24_v0 = vld [vmem:[%s157_s0 + $0x8] sm:$0xff]  ;;  %v23_v1 = vld [vmem:[%s157_s0] sm:$0xff]  ;;  %87 = vset.pattern.permute.xlu0 %v115_v3 }
   0x2   :  { %v22_v2 = vld [vmem:[%s159_s2] sm:$0xff]  ;;  %54 = vmatpush.msra.mxu0 %v24_v0 }
   0x3   :  { %21 = vst.msk [vmem:[#allocation2] sm:$0xff] %vm20_vm0, %v22_v2 }
   0x4   :  { %8 = vsyncpa [#allocation4], 0  ;;  %55 = vmatpush.msra.mxu0 %v23_v1  ;;  %v88_v5 = vld [vmem:[%s158_s1] ss:$0 sm:$0xff]  ;;  %s116_s0 = smov [#allocation3]   ;;  %s74_s22 = sshll.u32 %s160_s3, 4  ;;  %s75_s22 = int_to_ptr.hbm [resolvable:$true] %s74_s22 }
   0x5   :  { %83 = vmatmul.msk.f32.vlgmr.msra.gmra.mxu0 %vm36_vm1, %v22_v2  ;;  %s72_s2 = sshll.u32 %s116_s0, 4  ;;  %s117_s23 = smov 113   ;;  %s73_s2 = int_to_ptr.vmem [resolvable:$true] %s72_s2 }
   0xa   :  { %v25_v4 = vld [vmem:[#allocation2] sm:$0xff] }
   0xb   :  { %29 = vperm.xlu0 %87, %v25_v4  }
  0x7d   :  { %v30_v6 = vpop.permute.xlu0 %29 }
  0x7e   :  { %v35_v7 = vmul.f32 %v88_v5, %v30_v6 }
  0x82   :  { %v57_v8 = vpop.f32.mrf.mxu0 }
  0x83   :  { %v58_v9 = vadd.f32 %v57_v8, %v35_v7 }
  0x85   :  { %60 = vst.msk [vmem:[#allocation3] sm:$0xff] %vm36_vm1, %v58_v9  ;;  %62 = vrot.lane.b32.xlu0 %v58_v9, %s117_s23 }
  0x86   :  { %77 = dma.vmem_to_hbm [thread:$0]  %s73_s2, 128, %s75_s22, [#allocation4]  }
  0xf7   :  { %v63_v10 = vpop.permute.xlu0 %62 }
  0xf8   :  { %66 = vst.msk [vmem:[#allocation2] sm:$0xff] %vm20_vm0, %v63_v10 }
  0xf9   :  { %113 = dma.done.wait [#allocation4], 128  }
  0xfa   :  { %114 = vsyncadd [#allocation4], 4294967168 }
  0xfb   :  { %82 = vsyncpa [#allocation4], 1 }

</bundles_post_ra>
